<compile_context>
chip_gen: v6e
topology: v6e:2x2x1
jax: 0.10.0
libtpu: 0.0.40
codegen_flags: <defaults>
</compile_context>

<pallas_src>
import numpy as np
import jax
import jax.numpy as jnp
from jax.experimental import pallas as pl
from jax.experimental.pallas import tpu as pltpu


def _round_up(n, m):
    return ((n + m - 1) // m) * m


def poly_linear_kernel(x_ref, wlin_ref, q_ref, c_ref, o_ref):
    # x_ref:    (TILE_N, D) VMEM  -- streamed row tile of the input
    # wlin_ref: (1, D)      VMEM  -- degree-1 feature weights (resident)
    # q_ref:    (D, D)      VMEM  -- upper-triangular degree-2 weights (resident)
    # c_ref:    (1, 1)      VMEM  -- W[0,0] + linear bias (resident)
    # o_ref:    (TILE_N, 1) VMEM
    x = x_ref[...]                                                     # (TILE_N, D)
    # single MXU dot for the quadratic cross terms
    xq = jnp.dot(x, q_ref[...], preferred_element_type=jnp.float32)   # (TILE_N, D)
    # degree-1 term folded into the VPU multiply-add (no 1-wide matmul, no .T)
    t = x * (xq + wlin_ref[...])                                       # (TILE_N, D)
    o_ref[...] = jnp.sum(t, axis=-1, keepdims=True) + c_ref[...]       # (TILE_N, 1)


def prepare_poly_linear_params(W, b):
    """Fold sklearn's degree-2 feature ordering into (w_lin, Q, c).

    Done once on the host with numpy (weights are static) so the triu scatter
    never sits on the per-call critical path.
    """
    W = np.asarray(W, dtype=np.float32)
    b = np.asarray(b, dtype=np.float32)
    assert W.ndim == 2 and W.shape[0] == 1
    P = W.shape[1]
    # invert P = 1 + D + D*(D+1)/2
    D = int((np.sqrt(9 + 8 * (P - 1)) - 3) // 2)
    assert 1 + D + D * (D + 1) // 2 == P, "weight width is not a degree-2 poly size"

    w_lin = W[0, 1:1 + D].reshape(1, D)
    Q = np.zeros((D, D), dtype=np.float32)
    iu, ju = np.triu_indices(D)                 # row-major upper tri == sklearn order
    Q[iu, ju] = W[0, 1 + D:]
    c = np.array([[W[0, 0] + b[0]]], dtype=np.float32)
    return jnp.asarray(w_lin), jnp.asarray(Q), jnp.asarray(c)


def _choose_tile_n(n_rows):
    # Large tiles amortize the ~0.35us per-grid-step overhead; capped at 1024
    # rows so the double-buffered, 128-lane-padded tiles stay a few MiB even
    # on v7x's smaller VMEM.
    return min(1024, _round_up(max(n_rows, 8), 8))


def poly_linear_apply(x, w_lin, Q, c, *, tile_n=None):
    """y = squeeze(Linear(PolynomialFeatures(2)(x))) via the Pallas kernel."""
    x = jnp.asarray(x, jnp.float32)
    N, D = x.shape
    assert Q.shape == (D, D) and w_lin.shape == (1, D)

    if tile_n is None:
        tile_n = _choose_tile_n(N)
    tile_n = _round_up(tile_n, 8)

    n_pad = _round_up(N, tile_n)
    if n_pad != N:
        # zero-pad the ragged last tile; padded rows just produce `c` and are
        # sliced away below.
        x = jnp.pad(x, ((0, n_pad - N), (0, 0)))

    grid = (n_pad // tile_n,)

    out = pl.pallas_call(
        poly_linear_kernel,
        out_shape=jax.ShapeDtypeStruct((n_pad, 1), jnp.float32),
        grid_spec=pltpu.PrefetchScalarGridSpec(
            num_scalar_prefetch=0,
            grid=grid,
            in_specs=[
                pl.BlockSpec((tile_n, D), lambda i: (i, 0)),   # x: streamed tiles
                pl.BlockSpec((1, D),      lambda i: (0, 0)),   # w_lin: resident
                pl.BlockSpec((D, D),      lambda i: (0, 0)),   # Q: resident
                pl.BlockSpec((1, 1),      lambda i: (0, 0)),   # c: resident
            ],
            out_specs=pl.BlockSpec((tile_n, 1), lambda i: (i, 0)),
        ),
        compiler_params=pltpu.CompilerParams(
            # row tiles are independent -> shard across v7x's two TensorCores
            dimension_semantics=("parallel",),
        ),
    )(x, w_lin, Q, c)

    return jnp.squeeze(out[:N])        # matches torch .squeeze() on (N, 1)


def polynomial_model_forward(x, W, b, *, tile_n=None):
    """Convenience one-shot wrapper (params folded on the host each call)."""
    w_lin, Q, c = prepare_poly_linear_params(W, b)
    return poly_linear_apply(x, w_lin, Q, c, tile_n=tile_n)


def reference_forward(x, W, b):
    """Pure-JAX reference: explicit sklearn-ordered degree-2 features + linear."""
    x = jnp.asarray(x, jnp.float32)
    N, D = x.shape
    feats = [jnp.ones((N, 1), jnp.float32), x]
    for i in range(D):
        for j in range(i, D):
            feats.append((x[:, i] * x[:, j]).reshape(N, 1))
    xp = jnp.concatenate(feats, axis=1)                 # (N, P)
    return jnp.squeeze(xp @ jnp.asarray(W, jnp.float32).T + jnp.asarray(b, jnp.float32))


if __name__ == "__main__":
    key = jax.random.PRNGKey(0)

    # --- case 1: the module's nominal small shape (batch=8, input_dim=4) ---
    N, D = 8, 4
    P = 1 + D + D * (D + 1) // 2                        # 15 poly features
    kx, kw, kb, key = jax.random.split(key, 4)
    x = jax.random.normal(kx, (N, D), dtype=jnp.float32)
    W = jax.random.normal(kw, (1, P), dtype=jnp.float32) * 0.1   # Linear(P, 1) weight
    b = jax.random.normal(kb, (1,), dtype=jnp.float32) * 0.1     # Linear bias

    params = prepare_poly_linear_params(W, b)           # host-side, once
    y = jax.block_until_ready(poly_linear_apply(x, *params))
    y_ref = jax.block_until_ready(reference_forward(x, W, b))
    np.testing.assert_allclose(np.asarray(y), np.asarray(y_ref), rtol=1e-5, atol=1e-5)

    # --- case 2: exercise the N-grid, multi-tile path and ragged padding ---
    N2, D2 = 20, 6
    P2 = 1 + D2 + D2 * (D2 + 1) // 2
    kx2, kw2, kb2, key = jax.random.split(key, 4)
    x2 = jax.random.normal(kx2, (N2, D2), dtype=jnp.float32)
    W2 = jax.random.normal(kw2, (1, P2), dtype=jnp.float32) * 0.1
    b2 = jax.random.normal(kb2, (1,), dtype=jnp.float32) * 0.1

    y2 = jax.block_until_ready(polynomial_model_forward(x2, W2, b2, tile_n=8))
    y2_ref = jax.block_until_ready(reference_forward(x2, W2, b2))
    np.testing.assert_allclose(np.asarray(y2), np.asarray(y2_ref), rtol=1e-5, atol=1e-5)

    print("KERNEL_OK")
</pallas_src>

<mosaic_0001>
module attributes {stable_mosaic.version = 11 : i64} {
  func.func @poly_linear_kernel(%arg0: i32, %arg1: memref<8x4xf32, #tpu.memory_space<vmem>>, %arg2: memref<1x4xf32, #tpu.memory_space<vmem>>, %arg3: memref<4x4xf32, #tpu.memory_space<vmem>>, %arg4: memref<1x1xf32, #tpu.memory_space<vmem>>, %arg5: memref<8x1xf32, #tpu.memory_space<vmem>>) attributes {dimension_semantics = [#tpu.dimension_semantics<parallel>], iteration_bounds = array<i64: 1>, scalar_prefetch = 0 : i64, scratch_operands = 0 : i64, tpu.core_type = #tpu.core_type<tc>, window_params = [{transform_indices = @transform_0, window_bounds = array<i64: 8, 4>}, {pipeline_mode = #tpu.pipeline_mode<synchronous>, transform_indices = @transform_1, window_bounds = array<i64: 1, 4>}, {pipeline_mode = #tpu.pipeline_mode<synchronous>, transform_indices = @transform_2, window_bounds = array<i64: 4, 4>}, {pipeline_mode = #tpu.pipeline_mode<synchronous>, transform_indices = @transform_3, window_bounds = array<i64: 1, 1>}, {transform_indices = @transform_4, window_bounds = array<i64: 8, 1>}]} {
    %c0 = arith.constant 0 : index
    %c0_0 = arith.constant 0 : index
    %0 = vector.load %arg1[%c0, %c0_0] : memref<8x4xf32, #tpu.memory_space<vmem>>, vector<8x4xf32>
    %c0_1 = arith.constant 0 : index
    %c0_2 = arith.constant 0 : index
    %1 = vector.load %arg3[%c0_1, %c0_2] : memref<4x4xf32, #tpu.memory_space<vmem>>, vector<4x4xf32>
    %cst = arith.constant dense<0.000000e+00> : vector<8x4xf32>
    %2 = tpu.matmul %0, %1, %cst {dimension_numbers = #tpu.dot_dimension_numbers<[1], [0], [0], [1], [0, 0, 1, 1], [], []>} : vector<8x4xf32>, vector<4x4xf32>, vector<8x4xf32> -> vector<8x4xf32>
    %c0_3 = arith.constant 0 : index
    %c0_4 = arith.constant 0 : index
    %3 = vector.load %arg2[%c0_3, %c0_4] : memref<1x4xf32, #tpu.memory_space<vmem>>, vector<1x4xf32>
    %4 = vector.broadcast %3 : vector<1x4xf32> to vector<8x4xf32>
    %5 = arith.addf %2, %4 : vector<8x4xf32>
    %6 = arith.mulf %0, %5 : vector<8x4xf32>
    %cst_5 = arith.constant dense<0.000000e+00> : vector<8xf32>
    %7 = vector.multi_reduction <add>, %6, %cst_5 [1] : vector<8x4xf32> to vector<8xf32>
    %8 = vector.shape_cast %7 : vector<8xf32> to vector<8x1xf32>
    %c0_6 = arith.constant 0 : index
    %c0_7 = arith.constant 0 : index
    %9 = vector.load %arg4[%c0_6, %c0_7] : memref<1x1xf32, #tpu.memory_space<vmem>>, vector<1x1xf32>
    %10 = vector.broadcast %9 : vector<1x1xf32> to vector<8x1xf32>
    %11 = arith.addf %8, %10 : vector<8x1xf32>
    %c0_8 = arith.constant 0 : index
    %c0_9 = arith.constant 0 : index
    %12 = vector.load %arg5[%c0_8, %c0_9] : memref<8x1xf32, #tpu.memory_space<vmem>>, vector<8x1xf32>
    tpu.vector_store %arg5[%c0_8, %c0_9], %11 {strides = array<i32>} : memref<8x1xf32, #tpu.memory_space<vmem>>, vector<8x1xf32>,
    return
  }
  func.func @transform_0(%arg0: i32) -> (i32, i32) {
    %c0_i32 = arith.constant 0 : i32
    %c0_i32_0 = arith.constant 0 : i32
    return %arg0, %c0_i32 : i32, i32
  }
  func.func @transform_1(%arg0: i32) -> (i32, i32) {
    %c0_i32 = arith.constant 0 : i32
    %c0_i32_0 = arith.constant 0 : i32
    %c0_i32_1 = arith.constant 0 : i32
    return %c0_i32, %c0_i32_0 : i32, i32
  }
  func.func @transform_2(%arg0: i32) -> (i32, i32) {
    %c0_i32 = arith.constant 0 : i32
    %c0_i32_0 = arith.constant 0 : i32
    %c0_i32_1 = arith.constant 0 : i32
    return %c0_i32, %c0_i32_0 : i32, i32
  }
  func.func @transform_3(%arg0: i32) -> (i32, i32) {
    %c0_i32 = arith.constant 0 : i32
    %c0_i32_0 = arith.constant 0 : i32
    %c0_i32_1 = arith.constant 0 : i32
    return %c0_i32, %c0_i32_0 : i32, i32
  }
  func.func @transform_4(%arg0: i32) -> (i32, i32) {
    %c0_i32 = arith.constant 0 : i32
    %c0_i32_0 = arith.constant 0 : i32
    return %arg0, %c0_i32 : i32, i32
  }
}

</mosaic_0001>

<bundles_post_ra>
// kernel: tpu_custom_call.1
= control target key start
LH: loop header
LB: loop body
LE: loop exit
PB: predicated region body
PF: predicated region fallthrough
CT: control target
= control target key end

     0   :  { %vm32_vm0 = vcmask 1043456   ;;  %vm28_vm1 = vcmask 31744   ;;  %v137_v0 = vmov 0.0   ;;  %vm138_vm2 = vmmov 0   ;;  %s181_s2 = inlined_call_operand.vmem [shape: f32[4,4], index: 2, kind: input, shape index: {}]   ;;  %s182_s0 = inlined_call_operand.vmem [shape: f32[8,4], index: 0, kind: input, shape index: {}]   ;;  %s183_s3 = inlined_call_operand.<no memory space> [shape: f32[1,1], index: 3, kind: input, shape index: {}]   ;;  %s184_s1 = inlined_call_operand.vmem [shape: f32[1,4], index: 1, kind: input, shape index: {}]   ;;  %s185_s4 = inlined_call_operand.vmem [shape: f32[8,1], index: 4, kind: output, shape index: {}]  }
   0x1   :  { %130 = vmatprep.subr.mxu0 %v137_v0  ;;  %v20_v1 = vld [vmem:[%s181_s2] sm:$0xf]  ;;  %132 = vmatprep.mubr.msk.f32.mxu0 %vm138_vm2, %v137_v0  ;;  %v9_v3 = vstv %s183_s3  ;;  %vm118_vm3 = vcmask 7168  }
   0x2   :  { %v19_v2 = vld [vmem:[%s182_s0] sm:$0xff]  ;;  %131 = vmatpush3.msk.msra.mxu0 %vm32_vm0, %v20_v1  ;;  %10 = vst [vmem:[#allocation2] sm:$0x1] %v9_v3 }
   0x3   :  { %133 = vmatmul.mubr.msk.f32.vlgmr.msra.gmra.mxu0 %vm28_vm1, %v19_v2  ;;  %v124_v4 = vld [vmem:[%s184_s1] ss:$0 sm:$0xff] }
   0x9   :  { %v127_v10 = vld [vmem:[#allocation2] ss:$0 sm:$0xff] }
  0xc3   :  { %v102_v5 = vpop.f32.mrf.mxu0 }
  0xc4   :  { %v103_v6 = vadd.f32 %v124_v4, %v102_v5 }
  0xc5   :  { %v134_v7 = vpop.f32.mrf.mxu0 }
  0xc6   :  { %v106_v8 = vmul.f32 %v103_v6, %v19_v2 }
  0xc8   :  { %v107_v9 = vsel %vm28_vm1, %v106_v8, 0.0 }
  0xc9   :  { %108 = vadd.xlane.f32.xlu0 %v107_v9 }
 0x152   :  { %v109_v11 = vpop.xlane.xlu0 %108 }
 0x153   :  { %v117_v12 = vadd.f32 %v127_v10, %v109_v11 }
 0x155   :  { %119 = vst.msk [vmem:[%s185_s4] sm:$0xff] %vm118_vm3, %v117_v12 }

</bundles_post_ra>
